<compile_context>
chip_gen: v5e
topology: v5e:2x2
jax: 0.10.0
libtpu: 0.0.40
codegen_flags: <defaults>
</compile_context>

<pallas_src>
import functools
import math

import jax
import jax.numpy as jnp
from jax import lax
from jax.experimental import pallas as pl
from jax.experimental.pallas import tpu as pltpu

_LANE = 128


def _round_up(n, m):
    return ((n + m - 1) // m) * m


# ----------------------------- Pallas kernel ------------------------------ #
def _policy_kernel(x_ref, w_ref, out_ref, *, batch, agents, embed, act,
                   d_aug, r1, rb1, r2, rb2):
    """Fused ego-attention + MLP + action softmax.

    x_ref  : (B*N, d_aug) agent features with a trailing ones column (bias).
    w_ref  : (rows, 384)  packed weight slab (QKV | W1/b1 | W2/b2 segments).
    out_ref: (rows_pad, 128) lane-dense action probabilities (top-left B x A).
    """
    bn = batch * agents
    rows = out_ref.shape[0]                 # padded batch rows (multiple of 8)
    e_pad = rb1 - r1                        # sublane-aligned embed extent
    h_pad = rb2 - r2                        # sublane-aligned hidden extent

    x = x_ref[...]                                               # (B*N, d_aug)

    # Fused Q/K/V projection; the ones column of x picks up the bias row in
    # the slab.  Q/K/V land in lane tiles [0:128), [128:256), [256:384).
    qkv = jnp.dot(x, w_ref[0:d_aug, :],
                  preferred_element_type=jnp.float32)            # (B*N, 384)
    q_all = qkv[:, 0:_LANE]                                      # (B*N, 128)
    k_all = qkv[:, _LANE:2 * _LANE]                              # (B*N, 128)
    v_all = qkv[:, 2 * _LANE:3 * _LANE]                          # (B*N, 128)

    # Ego-query selection as a one-hot matmul (MXU is idle -> free) over the
    # padded row count; padded rows simply repeat real batches so the final
    # store is a full unmasked (8, 128) tile.
    col = lax.broadcasted_iota(jnp.int32, (rows, bn), 1)
    row = lax.broadcasted_iota(jnp.int32, (rows, bn), 0)
    rb = row % batch
    sel = (col == rb * agents).astype(jnp.float32)               # (rows, B*N)
    q_ego = jnp.dot(sel, q_all, preferred_element_type=jnp.float32)

    # Scaled dot-product attention, block-diagonal over each batch's agents.
    scores = lax.dot_general(q_ego, k_all, (((1,), (1,)), ((), ())),
                             preferred_element_type=jnp.float32)  # (rows, B*N)
    scores = scores * (1.0 / math.sqrt(embed))
    valid = (col >= rb * agents) & (col < (rb + 1) * agents)
    scores = jnp.where(valid, scores, -1e30)
    scores = scores - jnp.max(scores, axis=-1, keepdims=True)
    p = jnp.exp(scores)
    attn = p * pl.reciprocal(jnp.sum(p, axis=-1, keepdims=True), approx=False)

    ctx = jnp.dot(attn, v_all, preferred_element_type=jnp.float32)  # (rows,128)

    # MLP: Linear -> ReLU -> Linear.  All weight views are static ref slices
    # at sublane-aligned offsets; activation slices start at lane 0.
    h = (jnp.dot(ctx[:, 0:e_pad], w_ref[r1:rb1, 0:_LANE],
                 preferred_element_type=jnp.float32)
         + w_ref[rb1:rb1 + 1, 0:_LANE])
    h = jnp.maximum(h, 0.0)                                        # (rows, 128)
    logits = (jnp.dot(h[:, 0:h_pad], w_ref[r2:rb2, 0:_LANE],
                      preferred_element_type=jnp.float32)
              + w_ref[rb2:rb2 + 1, 0:_LANE])                       # (rows, 128)

    # Final action softmax over the first `act` lanes; padded lanes -> prob 0.
    lane_id = lax.broadcasted_iota(jnp.int32, (rows, _LANE), 1)
    logits = jnp.where(lane_id < act, logits, -1e30)
    logits = logits - jnp.max(logits, axis=-1, keepdims=True)
    ez = jnp.exp(logits)
    out_ref[...] = ez * pl.reciprocal(jnp.sum(ez, axis=-1, keepdims=True),
                                      approx=False)


# ------------------------------ JAX wrapper -------------------------------- #
def social_attention_policy_net(x, packed):
    """Forward pass. x: (B, N, D) or (N, D); returns (B, A) or (A,)."""
    squeeze = x.ndim == 2
    if squeeze:                 # un-batched: x[0] is ego, softmax over actions
        x = x[None]

    meta = packed["meta"]
    B, N, D = x.shape
    assert D == meta["D"], "state_dim mismatch with packed params"
    A = meta["A"]
    bn = B * N
    rows_pad = _round_up(B, 8)

    # Flatten + append the constant-1 bias column (plus zero padding up to the
    # slab's augmented input width) OUTSIDE the kernel -- cheap XLA ops.
    x2 = x.reshape(bn, D).astype(jnp.float32)
    aug = [x2, jnp.ones((bn, 1), jnp.float32)]
    if meta["d_aug"] > D + 1:
        aug.append(jnp.zeros((bn, meta["d_aug"] - D - 1), jnp.float32))
    x_aug = jnp.concatenate(aug, axis=1)

    cost = pl.CostEstimate(
        flops=int(2 * (bn * meta["d_aug"] * 3 * _LANE
                       + 3 * rows_pad * bn * _LANE
                       + rows_pad * meta["E"] * _LANE
                       + rows_pad * meta["H"] * _LANE)),
        transcendentals=int(rows_pad * (bn + _LANE) + 2 * rows_pad),
        bytes_accessed=int(4 * (x_aug.size + packed["slab"].size
                                + rows_pad * _LANE)),
    )

    vmem = pl.BlockSpec(memory_space=pltpu.MemorySpace.VMEM)
    out = pl.pallas_call(
        functools.partial(
            _policy_kernel, batch=B, agents=N, embed=meta["E"], act=A,
            d_aug=meta["d_aug"], r1=meta["r1"], rb1=meta["rb1"],
            r2=meta["r2"], rb2=meta["rb2"]),
        out_shape=jax.ShapeDtypeStruct((rows_pad, _LANE), jnp.float32),
        in_specs=[vmem, vmem],
        out_specs=vmem,
        cost_estimate=cost,
    )(x_aug, packed["slab"])

    out = out[:B, :A]
    return out[0] if squeeze else out


# --------------------------- parameter handling ----------------------------- #
def init_params(key, state_dim, embed_dim, hidden_dim, action_dim):
    """PyTorch nn.Linear default init: U(-1/sqrt(fan_in), 1/sqrt(fan_in))."""
    def linear(k, out_f, in_f):
        kw, kb = jax.random.split(k)
        bound = 1.0 / math.sqrt(in_f)
        w = jax.random.uniform(kw, (out_f, in_f), jnp.float32, -bound, bound)
        b = jax.random.uniform(kb, (1, out_f), jnp.float32, -bound, bound)
        return w, b

    ks = jax.random.split(key, 5)
    wq, bq = linear(ks[0], embed_dim, state_dim)
    wk, bk = linear(ks[1], embed_dim, state_dim)
    wv, bv = linear(ks[2], embed_dim, state_dim)
    w1, b1 = linear(ks[3], hidden_dim, embed_dim)
    w2, b2 = linear(ks[4], action_dim, hidden_dim)
    return dict(wq=wq, bq=bq, wk=wk, bk=bk, wv=wv, bv=bv,
                w1=w1, b1=b1, w2=w2, b2=b2)


def pack_params(p):
    """Pack all weights/biases into ONE lane-aligned f32 slab (done once).

    Layout (rows x 384), all unused entries exactly zero:
      rows [0, D)     : wq^T | wk^T | wv^T in lane tiles 0/1/2 (cols 0:E each)
      row  D          : bq   | bk   | bv   (picked up by x's ones column)
      rows [r1, rb1)  : w1^T (cols 0:H), sublane padded
      row  rb1        : b1   (cols 0:H)
      rows [r2, rb2)  : w2^T (cols 0:A), sublane padded
      row  rb2        : b2   (cols 0:A)
    """
    E, D = p["wq"].shape
    H = p["w1"].shape[0]
    A = p["w2"].shape[0]
    assert E <= _LANE and H <= _LANE and A <= _LANE

    d_aug = _round_up(D + 1, 8)
    r1 = d_aug
    rb1 = r1 + _round_up(E, 8)
    r2 = _round_up(rb1 + 1, 8)
    rb2 = r2 + _round_up(H, 8)
    rows = _round_up(rb2 + 1, 8)

    slab = jnp.zeros((rows, 3 * _LANE), jnp.float32)
    slab = slab.at[0:D, 0:E].set(p["wq"].T)
    slab = slab.at[0:D, _LANE:_LANE + E].set(p["wk"].T)
    slab = slab.at[0:D, 2 * _LANE:2 * _LANE + E].set(p["wv"].T)
    slab = slab.at[D, 0:E].set(p["bq"][0])
    slab = slab.at[D, _LANE:_LANE + E].set(p["bk"][0])
    slab = slab.at[D, 2 * _LANE:2 * _LANE + E].set(p["bv"][0])
    slab = slab.at[r1:r1 + E, 0:H].set(p["w1"].T)
    slab = slab.at[rb1, 0:H].set(p["b1"][0])
    slab = slab.at[r2:r2 + H, 0:A].set(p["w2"].T)
    slab = slab.at[rb2, 0:A].set(p["b2"][0])

    meta = dict(D=D, E=E, H=H, A=A, d_aug=d_aug, r1=r1, rb1=rb1, r2=r2,
                rb2=rb2)
    return dict(slab=slab, meta=meta)


# ------------------------------ pure-JAX ref -------------------------------- #
def reference_forward(x, p):
    if x.ndim == 2:
        return reference_forward(x[None], p)[0]
    ego = x[:, 0, :]
    q = ego @ p["wq"].T + p["bq"]
    k = jnp.einsum("bnd,ed->bne", x, p["wk"]) + p["bk"][0]
    v = jnp.einsum("bnd,ed->bne", x, p["wv"]) + p["bv"][0]
    scores = jnp.einsum("be,bne->bn", q, k) / math.sqrt(q.shape[-1])
    attn = jax.nn.softmax(scores, axis=-1)
    ctx = jnp.einsum("bn,bne->be", attn, v)
    h = jax.nn.relu(ctx @ p["w1"].T + p["b1"])
    logits = h @ p["w2"].T + p["b2"]
    return jax.nn.softmax(logits, axis=-1)


# ---------------------------------- main ------------------------------------ #
if __name__ == "__main__":
    B, N = 2, 8                 # batch, number of agents/vehicles
    state_dim = 16              # per-agent feature dim (D)
    embed_dim = state_dim       # Attention(state_dim, state_dim) -> E = D
    hidden_dim = 32
    action_dim = 5

    key = jax.random.PRNGKey(0)
    kx, kp = jax.random.split(key)
    x = jax.random.normal(kx, (B, N, state_dim), jnp.float32)
    params = init_params(kp, state_dim, embed_dim, hidden_dim, action_dim)
    packed = pack_params(params)

    out = jax.block_until_ready(social_attention_policy_net(x, packed))
    ref = reference_forward(x, params)
    assert out.shape == (B, action_dim)
    assert jnp.allclose(out, ref, atol=1e-5, rtol=1e-5)
    # probabilities should sum to 1 over the action dim
    assert jnp.allclose(jnp.sum(out, axis=-1), 1.0, atol=1e-5)

    # also exercise the un-batched (2-D input) path
    out1 = jax.block_until_ready(social_attention_policy_net(x[0], packed))
    assert out1.shape == (action_dim,)
    assert jnp.allclose(out1, reference_forward(x[0], params), atol=1e-5)

    print("KERNEL_OK")
</pallas_src>

<mosaic_0001>
module attributes {stable_mosaic.version = 11 : i64} {
  func.func @_policy_kernel(%arg0: memref<16x24xf32, #tpu.memory_space<vmem>>, %arg1: memref<88x384xf32, #tpu.memory_space<vmem>>, %arg2: memref<8x128xf32, #tpu.memory_space<vmem>>) attributes {dimension_semantics = [], scalar_prefetch = 0 : i64, scratch_operands = 0 : i64, tpu.core_type = #tpu.core_type<tc>} {
    %c0 = arith.constant 0 : index
    %c0_0 = arith.constant 0 : index
    %0 = vector.load %arg0[%c0, %c0_0] : memref<16x24xf32, #tpu.memory_space<vmem>>, vector<16x24xf32>
    %c0_1 = arith.constant 0 : index
    %c0_2 = arith.constant 0 : index
    %1 = vector.load %arg1[%c0_1, %c0_2] : memref<88x384xf32, #tpu.memory_space<vmem>>, vector<24x384xf32>
    %cst = arith.constant dense<0.000000e+00> : vector<16x384xf32>
    %2 = tpu.matmul %0, %1, %cst {dimension_numbers = #tpu.dot_dimension_numbers<[1], [0], [0], [1], [0, 0, 1, 1], [], []>} : vector<16x24xf32>, vector<24x384xf32>, vector<16x384xf32> -> vector<16x384xf32>
    %3 = vector.extract_strided_slice %2 {offsets = [0, 0], sizes = [16, 128], strides = [1, 1]} : vector<16x384xf32> to vector<16x128xf32>
    %4 = vector.extract_strided_slice %2 {offsets = [0, 128], sizes = [16, 128], strides = [1, 1]} : vector<16x384xf32> to vector<16x128xf32>
    %5 = vector.extract_strided_slice %2 {offsets = [0, 256], sizes = [16, 128], strides = [1, 1]} : vector<16x384xf32> to vector<16x128xf32>
    %6 = tpu.iota {dimensions = array<i32: 1>} : vector<8x16xi32>
    %7 = tpu.iota {dimensions = array<i32: 0>} : vector<8x16xi32>
    %c2_i32 = arith.constant 2 : i32
    %c0_i32 = arith.constant 0 : i32
    %8 = arith.cmpi eq, %c2_i32, %c0_i32 : i32
    %c1_i32 = arith.constant 1 : i32
    %9 = arith.select %8, %c1_i32, %c2_i32 : i32
    %10 = vector.broadcast %9 : i32 to vector<8x16xi32>
    %11 = arith.remsi %7, %10 : vector<8x16xi32>
    %c0_i32_3 = arith.constant 0 : i32
    %12 = vector.broadcast %c0_i32_3 : i32 to vector<8x16xi32>
    %13 = arith.cmpi ne, %11, %12 : vector<8x16xi32>
    %c0_i32_4 = arith.constant 0 : i32
    %14 = vector.broadcast %c0_i32_4 : i32 to vector<8x16xi32>
    %15 = arith.cmpi slt, %11, %14 : vector<8x16xi32>
    %c0_i32_5 = arith.constant 0 : i32
    %16 = arith.cmpi slt, %9, %c0_i32_5 : i32
    %17 = vector.broadcast %16 : i1 to vector<8x16xi1>
    %18 = vector.broadcast %17 : vector<8x16xi1> to vector<8x16xi1>
    %19 = arith.xori %15, %18 : vector<8x16xi1>
    %20 = arith.andi %19, %13 : vector<8x16xi1>
    %21 = vector.broadcast %9 : i32 to vector<8x16xi32>
    %22 = arith.addi %11, %21 : vector<8x16xi32>
    %23 = arith.select %20, %22, %11 : vector<8x16xi1>, vector<8x16xi32>
    %c8_i32 = arith.constant 8 : i32
    %24 = vector.broadcast %c8_i32 : i32 to vector<8x16xi32>
    %25 = arith.muli %23, %24 : vector<8x16xi32>
    %26 = arith.cmpi eq, %6, %25 : vector<8x16xi32>
    %27 = arith.extui %26 : vector<8x16xi1> to vector<8x16xi32>
    %28 = arith.sitofp %27 : vector<8x16xi32> to vector<8x16xf32>
    %cst_6 = arith.constant dense<0.000000e+00> : vector<8x128xf32>
    %29 = tpu.matmul %28, %3, %cst_6 {dimension_numbers = #tpu.dot_dimension_numbers<[1], [0], [0], [1], [0, 0, 1, 1], [], []>} : vector<8x16xf32>, vector<16x128xf32>, vector<8x128xf32> -> vector<8x128xf32>
    %cst_7 = arith.constant dense<0.000000e+00> : vector<8x16xf32>
    %30 = tpu.matmul %29, %4, %cst_7 {dimension_numbers = #tpu.dot_dimension_numbers<[1], [1], [0], [0], [0, 0, 1, 0], [], []>} : vector<8x128xf32>, vector<16x128xf32>, vector<8x16xf32> -> vector<8x16xf32>
    %cst_8 = arith.constant 2.500000e-01 : f32
    %31 = vector.broadcast %cst_8 : f32 to vector<8x16xf32>
    %32 = arith.mulf %30, %31 : vector<8x16xf32>
    %c8_i32_9 = arith.constant 8 : i32
    %33 = vector.broadcast %c8_i32_9 : i32 to vector<8x16xi32>
    %34 = arith.muli %23, %33 : vector<8x16xi32>
    %35 = arith.cmpi sge, %6, %34 : vector<8x16xi32>
    %c1_i32_10 = arith.constant 1 : i32
    %36 = vector.broadcast %c1_i32_10 : i32 to vector<8x16xi32>
    %37 = arith.addi %23, %36 : vector<8x16xi32>
    %c8_i32_11 = arith.constant 8 : i32
    %38 = vector.broadcast %c8_i32_11 : i32 to vector<8x16xi32>
    %39 = arith.muli %37, %38 : vector<8x16xi32>
    %40 = arith.cmpi slt, %6, %39 : vector<8x16xi32>
    %41 = arith.andi %35, %40 : vector<8x16xi1>
    %cst_12 = arith.constant -1.000000e+30 : f32
    %42 = vector.broadcast %cst_12 : f32 to vector<8x16xf32>
    %43 = arith.select %41, %32, %42 : vector<8x16xi1>, vector<8x16xf32>
    %cst_13 = arith.constant dense<0xFF800000> : vector<8xf32>
    %44 = vector.multi_reduction <maximumf>, %43, %cst_13 [1] : vector<8x16xf32> to vector<8xf32>
    %45 = vector.shape_cast %44 : vector<8xf32> to vector<8x1xf32>
    %46 = vector.broadcast %45 : vector<8x1xf32> to vector<8x16xf32>
    %47 = arith.subf %43, %46 : vector<8x16xf32>
    %48 = math.exp %47 : vector<8x16xf32>
    %cst_14 = arith.constant dense<0.000000e+00> : vector<8xf32>
    %49 = vector.multi_reduction <add>, %48, %cst_14 [1] : vector<8x16xf32> to vector<8xf32>
    %50 = vector.shape_cast %49 : vector<8xf32> to vector<8x1xf32>
    %51 = tpu.reciprocal %50 : vector<8x1xf32> -> vector<8x1xf32>
    %52 = vector.broadcast %51 : vector<8x1xf32> to vector<8x16xf32>
    %53 = arith.mulf %48, %52 : vector<8x16xf32>
    %cst_15 = arith.constant dense<0.000000e+00> : vector<8x128xf32>
    %54 = tpu.matmul %53, %5, %cst_15 {dimension_numbers = #tpu.dot_dimension_numbers<[1], [0], [0], [1], [0, 0, 1, 1], [], []>} : vector<8x16xf32>, vector<16x128xf32>, vector<8x128xf32> -> vector<8x128xf32>
    %55 = vector.extract_strided_slice %54 {offsets = [0, 0], sizes = [8, 16], strides = [1, 1]} : vector<8x128xf32> to vector<8x16xf32>
    %c24 = arith.constant 24 : index
    %c0_16 = arith.constant 0 : index
    %56 = vector.load %arg1[%c24, %c0_16] : memref<88x384xf32, #tpu.memory_space<vmem>>, vector<16x128xf32>
    %cst_17 = arith.constant dense<0.000000e+00> : vector<8x128xf32>
    %57 = tpu.matmul %55, %56, %cst_17 {dimension_numbers = #tpu.dot_dimension_numbers<[1], [0], [0], [1], [0, 0, 1, 1], [], []>} : vector<8x16xf32>, vector<16x128xf32>, vector<8x128xf32> -> vector<8x128xf32>
    %c40 = arith.constant 40 : index
    %c0_18 = arith.constant 0 : index
    %58 = vector.load %arg1[%c40, %c0_18] : memref<88x384xf32, #tpu.memory_space<vmem>>, vector<1x128xf32>
    %59 = vector.broadcast %58 : vector<1x128xf32> to vector<8x128xf32>
    %60 = arith.addf %57, %59 : vector<8x128xf32>
    %cst_19 = arith.constant 0.000000e+00 : f32
    %61 = vector.broadcast %cst_19 : f32 to vector<8x128xf32>
    %62 = arith.maximumf %60, %61 : vector<8x128xf32>
    %63 = vector.extract_strided_slice %62 {offsets = [0, 0], sizes = [8, 32], strides = [1, 1]} : vector<8x128xf32> to vector<8x32xf32>
    %c48 = arith.constant 48 : index
    %c0_20 = arith.constant 0 : index
    %64 = vector.load %arg1[%c48, %c0_20] : memref<88x384xf32, #tpu.memory_space<vmem>>, vector<32x128xf32>
    %cst_21 = arith.constant dense<0.000000e+00> : vector<8x128xf32>
    %65 = tpu.matmul %63, %64, %cst_21 {dimension_numbers = #tpu.dot_dimension_numbers<[1], [0], [0], [1], [0, 0, 1, 1], [], []>} : vector<8x32xf32>, vector<32x128xf32>, vector<8x128xf32> -> vector<8x128xf32>
    %c80 = arith.constant 80 : index
    %c0_22 = arith.constant 0 : index
    %66 = vector.load %arg1[%c80, %c0_22] : memref<88x384xf32, #tpu.memory_space<vmem>>, vector<1x128xf32>
    %67 = vector.broadcast %66 : vector<1x128xf32> to vector<8x128xf32>
    %68 = arith.addf %65, %67 : vector<8x128xf32>
    %69 = tpu.iota {dimensions = array<i32: 1>} : vector<8x128xi32>
    %c5_i32 = arith.constant 5 : i32
    %70 = vector.broadcast %c5_i32 : i32 to vector<8x128xi32>
    %71 = arith.cmpi slt, %69, %70 : vector<8x128xi32>
    %cst_23 = arith.constant -1.000000e+30 : f32
    %72 = vector.broadcast %cst_23 : f32 to vector<8x128xf32>
    %73 = arith.select %71, %68, %72 : vector<8x128xi1>, vector<8x128xf32>
    %cst_24 = arith.constant dense<0xFF800000> : vector<8xf32>
    %74 = vector.multi_reduction <maximumf>, %73, %cst_24 [1] : vector<8x128xf32> to vector<8xf32>
    %75 = vector.shape_cast %74 : vector<8xf32> to vector<8x1xf32>
    %76 = vector.broadcast %75 : vector<8x1xf32> to vector<8x128xf32>
    %77 = arith.subf %73, %76 : vector<8x128xf32>
    %78 = math.exp %77 : vector<8x128xf32>
    %cst_25 = arith.constant dense<0.000000e+00> : vector<8xf32>
    %79 = vector.multi_reduction <add>, %78, %cst_25 [1] : vector<8x128xf32> to vector<8xf32>
    %80 = vector.shape_cast %79 : vector<8xf32> to vector<8x1xf32>
    %81 = tpu.reciprocal %80 : vector<8x1xf32> -> vector<8x1xf32>
    %82 = vector.broadcast %81 : vector<8x1xf32> to vector<8x128xf32>
    %83 = arith.mulf %78, %82 : vector<8x128xf32>
    %c0_26 = arith.constant 0 : index
    %c0_27 = arith.constant 0 : index
    %84 = vector.load %arg2[%c0_26, %c0_27] : memref<8x128xf32, #tpu.memory_space<vmem>>, vector<8x128xf32>
    tpu.vector_store %arg2[%c0_26, %c0_27], %83 {strides = array<i32>} : memref<8x128xf32, #tpu.memory_space<vmem>>, vector<8x128xf32>,
    return
  }
}

</mosaic_0001>

<bundles_post_ra>
// kernel: tpu_custom_call.1
= control target key start
LH: loop header
LB: loop body
LE: loop exit
PB: predicated region body
PF: predicated region fallthrough
CT: control target
= control target key end

     0   :  { %7 = vsyncpa [#allocation3], 0  ;;  %s502_s0 = inlined_call_operand.hbm [shape: f32[16,24], index: 0, kind: input, shape index: {}]   ;;  %s503_s1 = inlined_call_operand.hbm [shape: f32[88,384], index: 1, kind: input, shape index: {}]   ;;  %s504_s2 = inlined_call_operand.hbm [shape: f32[8,128], index: 2, kind: output, shape index: {}]  }
   0x1   :  { %8 = vsyncpa [#allocation6], 0 }
   0x2   :  { %9 = vsyncpa [#allocation4], 0  ;;  %s14_s11 = sshll.u32 %s502_s0, 4  ;;  %s453_s12 = smov [#allocation2]   ;;  %s15_s11 = int_to_ptr.hbm [resolvable:$true] %s14_s11 }
   0x3   :  { %s16_s13 = sshll.u32 %s453_s12, 4  ;;  %s27_s16 = sshll.u32 %s503_s1, 4  ;;  %s17_s13 = int_to_ptr.vmem [resolvable:$true] %s16_s13  ;;  %s28_s16 = int_to_ptr.hbm [resolvable:$true] %s27_s16 }
   0x4   :  { %s454_s17 = smov 128   ;;  %s455_s18 = smov 8  }
   0x5   :  { %22 = dma.hbm_to_vmem [thread:$0]  %s15_s11, 256, %s17_s13, [#allocation3], %s454_s17, %s454_s17, %s455_s18  }
   0x6   :  { %s456_s19 = smov [#allocation5]   ;;  %s457_s21 = smov 384  }
   0x7   :  { %s29_s20 = sshll.u32 %s456_s19, 4  ;;  %s458_s22 = smov 24   ;;  %s30_s20 = int_to_ptr.vmem [resolvable:$true] %s29_s20 }
   0x8   :  { %35 = dma.hbm_to_vmem [thread:$0]  %s28_s16, 4224, %s30_s20, [#allocation6], %s457_s21, %s457_s21, %s458_s22  }
   0x9   :  { %447 = dma.done.wait [#allocation3], 256  }
   0xa   :  { %448 = vsyncadd [#allocation3], 4294967040 }
   0xb   :  { %449 = dma.done.wait [#allocation6], 4224  }
   0xc   :  { %450 = vsyncadd [#allocation6], 4294963072  ;;  %v52_v0 = vld [vmem:[#allocation5 + $0x30] sm:$0xff]  ;;  %v49_v1 = vld [vmem:[#allocation5 + $0x18] sm:$0xff]  ;;  %vm55_vm0 = vcmask 195584   ;;  %v131_v8 = vlaneseq  ;;  %v459_v16 = vmov 0.0  }
   0xd   :  { %75 = vmatpush.msra.mxu0 %v52_v0  ;;  %v53_v2 = vld [vmem:[#allocation5 + $0x38] sm:$0xff]  ;;  %v46_v3 = vld [vmem:[#allocation5] sm:$0xff]  ;;  %v44_v5 = vld [vmem:[#allocation2] sm:$0xff]  ;;  %vm151_vm2 = vcmask 130048   ;;  %vm281_vm10 = vcmask 261120   ;;  %s460_s0 = smov [#allocation7]  }
   0xe   :  { %98 = vmatpush.msra.mxu1 %v53_v2  ;;  %v50_v4 = vld [vmem:[#allocation5 + $0x20] sm:$0xff]  ;;  %v47_v6 = vld [vmem:[#allocation5 + $0x8] sm:$0xff]  ;;  %v45_v7 = vld [vmem:[#allocation2 + $0x8] sm:$0xff]  ;;  %v134_v9 = vshrl.u32 %v131_v8, 7  ;;  %v486_v13 = vand.u32 127, %v131_v8  ;;  %s335_s1 = sshll.u32 %s460_s0, 4  ;;  %s336_s1 = int_to_ptr.vmem [resolvable:$true] %s335_s1 }
   0xf   :  { %76 = vmatpush.msra.mxu0 %v49_v1  ;;  %v54_v20 = vld [vmem:[#allocation5 + $0x40] sm:$0xff]  ;;  %v51_v21 = vld [vmem:[#allocation5 + $0x28] sm:$0xff]  ;;  %v48_v22 = vld [vmem:[#allocation5 + $0x10] sm:$0xff]  ;;  %s337_s25 = sshll.u32 %s504_s2, 4  ;;  %s338_s25 = int_to_ptr.hbm [resolvable:$true] %s337_s25 }
  0x10   :  { %99 = vmatpush.msra.mxu1 %v50_v4  ;;  %v139_v10 = vand.u32 1, %v134_v9  ;;  %121 = vmatpush.msra.mxu2 %v54_v20  ;;  %v250_v36 = vld [vmem:[#allocation5 + $0x60] sm:$0xff]  ;;  %v249_v37 = vld [vmem:[#allocation5 + $0x48] sm:$0xff]  ;;  %v279_v50 = vld [vmem:[#allocation5 + $0xd8] sm:$0xff]  ;;  %vm305_vm11 = vcmp.lt.s32.totalorder %v486_v13, 5 }
  0x11   :  { %77 = vmatpush.msra.mxu0 %v46_v3  ;;  %v278_v51 = vld [vmem:[#allocation5 + $0xc0] sm:$0xff]  ;;  %v277_v52 = vld [vmem:[#allocation5 + $0xa8] sm:$0xff]  ;;  %v276_v54 = vld [vmem:[#allocation5 + $0x90] sm:$0xff] }
  0x12   :  { %348 = vmatmul.msk.f32.vlgmr.msra.gmra.mxu0 %vm55_vm0, %v44_v5  ;;  %100 = vmatpush.msra.mxu1 %v47_v6  ;;  %v147_v14 = vmul.u32 8, %v139_v10  ;;  %v197_v23 = vadd.s32 1, %v139_v10  ;;  %v251_v55 = vld [vmem:[#allocation5 + $0x78] ss:$0 sm:$0xff]  ;;  %v280_v59 = vld [vmem:[#allocation5 + $0xf0] ss:$0 sm:$0xff] }
  0x13   :  { %350 = vmatmul.msk.f32.vlgmr.msra.gmra.mxu1 %vm55_vm0, %v44_v5  ;;  %122 = vmatpush.msra.mxu2 %v51_v21 }
  0x14   :  { %vm148_vm1 = vcmp.eq.s32.totalorder %v486_v13, %v147_v14  ;;  %v198_v24 = vmul.u32 8, %v197_v23  ;;  %vm196_vm3 = vcmp.ge.s32.totalorder %v486_v13, %v147_v14  ;;  %269 = vmatpush.msrb.mxu0 %v250_v36  ;;  %297 = vmatpush.msrb.mxu1 %v279_v50 }
  0x15   :  { %v354_v17 = vsel %vm148_vm1, 1.0, %v459_v16  ;;  %123 = vmatpush.msra.mxu2 %v48_v22 }
  0x16   :  { %352 = vmatmul.msk.f32.vlgmr.msra.gmra.mxu2 %vm55_vm0, %v44_v5  ;;  %vm199_vm4 = vcmp.lt.s32.totalorder %v486_v13, %v198_v24  ;;  %270 = vmatpush.msrb.mxu0 %v249_v37 }
  0x17   :  { %vm200_vm5 = vmand %vm196_vm3, %vm199_vm4  ;;  %298 = vmatpush.msrb.mxu1 %v278_v51 }
  0x19   :  { %299 = vmatpush.msrb.mxu1 %v277_v52 }
  0x1a   :  { %349 = vmatmul.msk.f32.gmra.mxu0 %vm55_vm0, %v45_v7 }
  0x1b   :  { %351 = vmatmul.msk.f32.gmra.mxu1 %vm55_vm0, %v45_v7 }
  0x1c   :  { %300 = vmatpush.msrb.mxu1 %v276_v54 }
  0x1e   :  { %353 = vmatmul.msk.f32.gmra.mxu2 %vm55_vm0, %v45_v7 }
  0x8f   :  { %v79_v11 = vpop.f32.mrf.mxu0 }
  0x90   :  { %v102_v12 = vpop.f32.mrf.mxu1 }
  0x97   :  { %v82_v15 = vpop.f32.mrf.mxu0 }
  0x98   :  { %169 = vmatpush.msra.mxu3 %v82_v15  ;;  %v105_v18 = vpop.f32.mrf.mxu1 }
  0x99   :  { %v125_v34 = vpop.f32.mrf.mxu2 }
  0x9a   :  { %170 = vmatpush.msra.mxu3 %v79_v11 }
  0x9b   :  { %355 = vmatmul.msk.f32.vlgmr.msra.gmra.mxu3 %vm151_vm2, %v354_v17 }
  0x9c   :  { %189 = vmatpush.xpose.msrb.mxu3 %v105_v18 }
  0xa0   :  { %190 = vmatpush.xpose.msrb.mxu3 %v102_v12 }
  0xa1   :  { %v128_v35 = vpop.f32.mrf.mxu2 }
  0xa4   :  { %243 = vmatpush.msra.mxu3 %v128_v35 }
  0xa6   :  { %244 = vmatpush.msra.mxu3 %v125_v34 }
 0x11e   :  { %v172_v19 = vpop.f32.mrf.mxu3 }
 0x11f   :  { %191 = vmatmul.f32.vlgmr.msrb.gmra.mxu3 %v172_v19 }
 0x1a2   :  { %v192_v25 = vpop.f32.mrf.mxu3 }
 0x1a3   :  { %v195_v26 = vmul.f32 0.25, %v192_v25 }
 0x1a5   :  { %v201_v27 = vsel %vm200_vm5, %v195_v26, -1e+30 }
 0x1a6   :  { %v202_v28 = vsel %vm151_vm2, %v201_v27, -inf }
 0x1a7   :  { %203 = vmax.xlane.f32.xlu0 %v202_v28 }
 0x21a   :  { %v204_v29 = vpop.xlane.xlu0 %203 }
 0x21b   :  { %v205_v30 = vsub.f32 %v201_v27, %v204_v29 }
 0x21d   :  { %v206_v31 = vmul.f32 1.442695, %v205_v30 }
 0x21f   :  { %367 = vpow2.f32 %v206_v31 }
 0x225   :  { %v368_v32 = vpop.eup %367 }
 0x226   :  { %v208_v33 = vsel %vm151_vm2, %v368_v32, 0.0 }
 0x227   :  { %209 = vadd.xlane.f32.xlu0 %v208_v33 }
 0x29a   :  { %v210_v38 = vpop.xlane.xlu0 %209 }
 0x29b   :  { %369 = vrcp.f32 %v210_v38  ;;  %v222_v42 = vand.u32 2147483648, %v210_v38  ;;  %v220_v44 = vand.u32 2147483647, %v210_v38  ;;  %vm216_vm7 = vweird.f32 %v210_v38 }
 0x29d   :  { %v223_v46 = vor.u32 1.1754944e-38, %v222_v42  ;;  %vm221_vm9 = vcmp.eq.f32.partialorder %v220_v44, 8.507059e+37 }
 0x2a1   :  { %v370_v39 = vpop.eup %369 }
 0x2a2   :  { %v212_v40 = vmul.f32 %v370_v39, %v210_v38  ;;  %vm217_vm6 = vweird.f32 %v370_v39 }
 0x2a3   :  { %vm218_vm8 = vmor %vm216_vm7, %vm217_vm6 }
 0x2a4   :  { %v213_v41 = vsub.f32 1.0, %v212_v40 }
 0x2a6   :  { %v214_v43 = vmul.f32 %v370_v39, %v213_v41 }
 0x2a8   :  { %v215_v45 = vadd.f32 %v370_v39, %v214_v43 }
 0x2aa   :  { %v219_v47 = vsel %vm218_vm8, %v370_v39, %v215_v45 }
 0x2ab   :  { %v224_v48 = vsel %vm221_vm9, %v223_v46, %v219_v47 }
 0x2ac   :  { %v225_v49 = vmul.f32 %v368_v32, %v224_v48 }
 0x2ae   :  { %356 = vmatmul.msk.f32.vlgmr.msra.gmra.mxu3 %vm151_vm2, %v225_v49 }
 0x331   :  { %v246_v53 = vpop.f32.mrf.mxu3 }
 0x332   :  { %357 = vmatmul.msk.f32.vlgmr.msrb.gmra.mxu0 %vm151_vm2, %v246_v53 }
 0x3af   :  { %v272_v56 = vpop.f32.mrf.mxu0 }
 0x3b0   :  { %v273_v57 = vadd.f32 %v272_v56, %v251_v55 }
 0x3b2   :  { %v275_v58 = vmax.f32 %v273_v57, 0.0 }
 0x3b4   :  { %358 = vmatmul.msk.f32.vlgmr.msrb.gmra.mxu1 %vm281_vm10, %v275_v58 }
 0x431   :  { %v302_v60 = vpop.f32.mrf.mxu1 }
 0x432   :  { %v303_v61 = vadd.f32 %v302_v60, %v280_v59 }
 0x434   :  { %v306_v62 = vsel %vm305_vm11, %v303_v61, -1e+30 }
 0x435   :  { %307 = vmax.xlane.f32.xlu1 %v306_v62 }
 0x4a8   :  { %v308_v63 = vpop.xlane.xlu1 %307 }
 0x4a9   :  { %v309_v0 = vsub.f32 %v306_v62, %v308_v63 }
 0x4ab   :  { %v310_v1 = vmul.f32 1.442695, %v309_v0 }
 0x4ad   :  { %371 = vpow2.f32 %v310_v1 }
 0x4b3   :  { %v372_v2 = vpop.eup %371 }
 0x4b4   :  { %312 = vadd.xlane.f32.xlu1 %v372_v2 }
 0x527   :  { %v313_v3 = vpop.xlane.xlu1 %312 }
 0x528   :  { %373 = vrcp.f32 %v313_v3  ;;  %v325_v7 = vand.u32 2147483648, %v313_v3  ;;  %v323_v9 = vand.u32 2147483647, %v313_v3  ;;  %vm319_vm13 = vweird.f32 %v313_v3 }
 0x52a   :  { %v326_v11 = vor.u32 1.1754944e-38, %v325_v7  ;;  %vm324_vm15 = vcmp.eq.f32.partialorder %v323_v9, 8.507059e+37 }
 0x52e   :  { %v374_v4 = vpop.eup %373 }
 0x52f   :  { %v315_v5 = vmul.f32 %v374_v4, %v313_v3  ;;  %vm320_vm12 = vweird.f32 %v374_v4 }
 0x530   :  { %vm321_vm14 = vmor %vm319_vm13, %vm320_vm12 }
 0x531   :  { %v316_v6 = vsub.f32 1.0, %v315_v5 }
 0x533   :  { %v317_v8 = vmul.f32 %v374_v4, %v316_v6 }
 0x535   :  { %v318_v10 = vadd.f32 %v374_v4, %v317_v8 }
 0x537   :  { %v322_v12 = vsel %vm321_vm14, %v374_v4, %v318_v10 }
 0x538   :  { %v327_v13 = vsel %vm324_vm15, %v326_v11, %v322_v12 }
 0x539   :  { %v328_v14 = vmul.f32 %v372_v2, %v327_v13 }
 0x53b   :  { %329 = vst [vmem:[#allocation7] sm:$0xff] %v328_v14 }
 0x53c   :  { %340 = dma.vmem_to_hbm [thread:$0]  %s336_s1, 128, %s338_s25, [#allocation4]  }
 0x53d   :  { %451 = dma.done.wait [#allocation4], 128  }
 0x53e   :  { %452 = vsyncadd [#allocation4], 4294967168 }
 0x53f   :  { %345 = vsyncpa [#allocation3], 1 }
 0x540   :  { %346 = vsyncpa [#allocation6], 1 }
 0x541   :  { %347 = vsyncpa [#allocation4], 1 }

</bundles_post_ra>
